<compile_context>
chip_gen: v6e
topology: v6e:2x2x1
jax: 0.10.0
libtpu: 0.0.40
codegen_flags: <defaults>
</compile_context>

<pallas_src>
import jax
import jax.numpy as jnp
from jax.experimental import pallas as pl
from jax.experimental.pallas import tpu as pltpu

_LANE = 128


def _round_up(x, m):
    return ((x + m - 1) // m) * m


def _l2sq_mlp_kernel(x_ref, w1_ref, b1_ref, w2_ref, b2_ref, w3_ref, b3_ref,
                     o_ref):
    """Fused 3-layer MLP: relu(x@W1+b1) -> relu(.@W2+b2) -> .@W3+b3 -> exp."""
    w_dtype = w1_ref.dtype
    x = x_ref[...]
    if x.dtype != w_dtype:
        # bf16/fp8 streaming: cast the MXU operand in-kernel (the wrapper
        # never re-writes x in HBM).
        x = x.astype(w_dtype)

    # fc1 + relu  (f32 accumulation; elementwise math in f32)
    h1 = jnp.dot(x, w1_ref[...], preferred_element_type=jnp.float32)
    h1 = jnp.maximum(h1 + b1_ref[...], 0.0)

    # fc2 + relu
    h2 = jnp.dot(h1.astype(w_dtype), w2_ref[...],
                 preferred_element_type=jnp.float32)
    h2 = jnp.maximum(h2 + b2_ref[...], 0.0)

    # fc3 + exp (exp runs on the EUP slot; store is the unpadded (TB, G) tile)
    s = jnp.dot(h2.astype(w_dtype), w3_ref[...],
                preferred_element_type=jnp.float32)
    s = s + b3_ref[...]
    o_ref[...] = jnp.exp(s).astype(o_ref.dtype)


def prepare_l2sq_params(params, compute_dtype=jnp.float32):
    """One-time weight prep (hoisted out of the per-call forward path).

    Pads the tiny hidden dims (F/2, F/4) up to 128 lanes so every MXU pass is
    full-lane and casts the weights to `compute_dtype` (bf16 halves resident
    weight bytes; fp8 dtypes are accepted on v7x).  Biases stay f32.  Padded
    columns/rows are zero, so ReLU keeps them exactly zero and real outputs
    are uncontaminated.  The output dim (num_groups) is NOT padded.
    """
    w1, b1 = params["w1"], params["b1"]
    w2, b2 = params["w2"], params["b2"]
    w3, b3 = params["w3"], params["b3"]
    H1, H2 = w1.shape[1], w2.shape[1]
    H1p, H2p = _round_up(H1, _LANE), _round_up(H2, _LANE)
    return {
        "w1": jnp.pad(w1, ((0, 0), (0, H1p - H1))).astype(compute_dtype),
        "b1": jnp.pad(b1, ((0, 0), (0, H1p - H1))).astype(jnp.float32),
        "w2": jnp.pad(w2, ((0, H1p - H1), (0, H2p - H2))).astype(compute_dtype),
        "b2": jnp.pad(b2, ((0, 0), (0, H2p - H2))).astype(jnp.float32),
        "w3": jnp.pad(w3, ((0, H2p - H2), (0, 0))).astype(compute_dtype),
        "b3": b3.astype(jnp.float32),
    }


def l2sq_forward(x, prepared, *, block_b=2048):
    """x: [B, num_features].  prepared: result of prepare_l2sq_params().

    Returns exp(scores): [B, num_groups] float32.
    """
    w1p, b1p = prepared["w1"], prepared["b1"]
    w2p, b2p = prepared["w2"], prepared["b2"]
    w3p, b3p = prepared["w3"], prepared["b3"]

    B, F = x.shape
    H1p, H2p, G = w1p.shape[1], w2p.shape[1], w3p.shape[1]
    x_itemsize = x.dtype.itemsize
    w_itemsize = w1p.dtype.itemsize

    # ---- Batch tiling -------------------------------------------------------
    # Sub-32-bit operands pack two rows per sublane -> 16-row granularity.
    row_gran = 16 if min(x_itemsize, w_itemsize) < 4 else 8
    block_b = max(_round_up(block_b, row_gran), row_gran)
    # Keep the double-buffered x tile within a comfortable VMEM budget.
    tb_cap = max(row_gran,
                 ((16 << 20) // (2 * F * x_itemsize)) // row_gran * row_gran)
    block_b = min(block_b, tb_cap)

    B_row = _round_up(B, row_gran)
    if B_row <= block_b:
        n_blocks, TB = 1, B_row
    else:
        # Adaptive tile: padding waste bounded by ~n_blocks*row_gran rows
        # instead of up to TB-1 rows for unlucky batch sizes.
        n_blocks = -(-B_row // block_b)
        TB = _round_up(-(-B_row // n_blocks), row_gran)
    B_pad = n_blocks * TB

    xp = x if B_pad == B else jnp.pad(x, ((0, B_pad - B), (0, 0)))

    # ---- VMEM / cost bookkeeping -------------------------------------------
    weight_bytes = sum(int(a.size) * a.dtype.itemsize
                       for a in (w1p, b1p, w2p, b2p, w3p, b3p))
    stream_bytes = 2 * TB * F * x_itemsize + 2 * TB * G * 4
    interm_bytes = 4 * TB * max(H1p, H2p, _LANE) * 4
    vmem_limit = int(min(max(2 * (weight_bytes + stream_bytes + interm_bytes),
                             32 << 20), 100 << 20))

    cost = pl.CostEstimate(
        flops=2 * B_pad * (F * H1p + H1p * H2p + H2p * G),
        transcendentals=B_pad * G,
        bytes_accessed=(B_pad * F * x_itemsize    # x stream
                        + B_pad * G * 4           # output stream (unpadded)
                        + weight_bytes),          # resident weights
    )

    compiler_params = pltpu.CompilerParams(
        dimension_semantics=("parallel",),   # batch axis shards across cores
        vmem_limit_bytes=vmem_limit,
    )

    def make_call(weight_pipeline_mode):
        def resident(arr):
            if weight_pipeline_mode is None:
                return pl.BlockSpec(arr.shape, lambda i: (0, 0))
            return pl.BlockSpec(arr.shape, lambda i: (0, 0),
                                pipeline_mode=weight_pipeline_mode)
        return pl.pallas_call(
            _l2sq_mlp_kernel,
            out_shape=jax.ShapeDtypeStruct((B_pad, G), jnp.float32),
            grid=(n_blocks,),
            in_specs=[
                pl.BlockSpec((TB, F), lambda i: (i, 0)),  # x: streamed tiles
                resident(w1p), resident(b1p),
                resident(w2p), resident(b2p),
                resident(w3p), resident(b3p),
            ],
            out_specs=pl.BlockSpec((TB, G), lambda i: (i, 0)),
            compiler_params=compiler_params,
            cost_estimate=cost,
        )

    args = (xp, w1p, b1p, w2p, b2p, w3p, b3p)
    try:
        # Resident weights never re-DMA: single-buffer them (halves their
        # VMEM footprint at zero perf cost).
        out = make_call(pl.Buffered(1))(*args)
    except Exception:
        # Fallback if this jax/backend rejects pipeline_mode on the top-level
        # grid; numerically identical, just double-buffers the weights.
        out = make_call(None)(*args)

    return out[:B] if B_pad != B else out


def init_l2sq_params(key, num_groups):
    """Deterministic init mimicking torch.nn.Linear default U[-1/sqrt(in), 1/sqrt(in)]."""
    num_features = num_groups * 18
    dims = [num_features, num_features // 2, num_features // 4, num_groups]
    params = {}
    for i in range(3):
        fan_in, fan_out = dims[i], dims[i + 1]
        key, kw, kb = jax.random.split(key, 3)
        bound = 1.0 / jnp.sqrt(float(fan_in))
        # Stored as (in, out) — transpose of torch's (out, in) layout.
        params[f"w{i + 1}"] = jax.random.uniform(
            kw, (fan_in, fan_out), jnp.float32, -bound, bound)
        params[f"b{i + 1}"] = jax.random.uniform(
            kb, (1, fan_out), jnp.float32, -bound, bound)
    return params


def _reference_forward(x, params):
    h1 = jnp.maximum(x @ params["w1"] + params["b1"], 0.0)
    h2 = jnp.maximum(h1 @ params["w2"] + params["b2"], 0.0)
    return jnp.exp(h2 @ params["w3"] + params["b3"])


if __name__ == "__main__":
    # TODO(synk): features()/init_state()/test()/test_online()/roll_out()/train()
    # are host-side numpy ranking / training-loop logic, not part of the
    # nn.Module forward; only forward() is implemented as a Pallas kernel.
    num_groups = 4
    num_features = num_groups * 18   # 72

    key = jax.random.PRNGKey(0)
    key, kx1, kx2 = jax.random.split(key, 3)
    params = init_l2sq_params(key, num_groups)
    prepared = prepare_l2sq_params(params)   # one-time weight prep (hoisted)

    # Case 1: tiny batch, single grid block.
    x1 = jax.random.normal(kx1, (2, num_features), jnp.float32)
    out1 = jax.block_until_ready(l2sq_forward(x1, prepared))
    ref1 = _reference_forward(x1, params)
    assert out1.shape == (2, num_groups), out1.shape
    assert jnp.allclose(out1, ref1, rtol=1e-5, atol=1e-5), (out1, ref1)

    # Case 2: multi-block grid + adaptive batch tiling (B=37, TB<=16).
    x2 = jax.random.normal(kx2, (37, num_features), jnp.float32)
    out2 = jax.block_until_ready(l2sq_forward(x2, prepared, block_b=16))
    ref2 = _reference_forward(x2, params)
    assert out2.shape == (37, num_groups), out2.shape
    assert jnp.allclose(out2, ref2, rtol=1e-5, atol=1e-5), (out2, ref2)

    print("KERNEL_OK")
</pallas_src>

<mosaic_0001>
module attributes {stable_mosaic.version = 11 : i64} {
  func.func @_l2sq_mlp_kernel(%arg0: i32, %arg1: memref<8x72xf32, #tpu.memory_space<vmem>>, %arg2: memref<72x128xf32, #tpu.memory_space<vmem>>, %arg3: memref<1x128xf32, #tpu.memory_space<vmem>>, %arg4: memref<128x128xf32, #tpu.memory_space<vmem>>, %arg5: memref<1x128xf32, #tpu.memory_space<vmem>>, %arg6: memref<128x4xf32, #tpu.memory_space<vmem>>, %arg7: memref<1x4xf32, #tpu.memory_space<vmem>>, %arg8: memref<8x4xf32, #tpu.memory_space<vmem>>) attributes {dimension_semantics = [#tpu.dimension_semantics<parallel>], iteration_bounds = array<i64: 1>, scalar_prefetch = 0 : i64, scratch_operands = 0 : i64, tpu.core_type = #tpu.core_type<tc>, window_params = [{transform_indices = @transform_0, window_bounds = array<i64: 8, 72>}, {pipeline_mode = #tpu.pipeline_mode<synchronous>, transform_indices = @transform_1, window_bounds = array<i64: 72, 128>}, {pipeline_mode = #tpu.pipeline_mode<synchronous>, transform_indices = @transform_2, window_bounds = array<i64: 1, 128>}, {pipeline_mode = #tpu.pipeline_mode<synchronous>, transform_indices = @transform_3, window_bounds = array<i64: 128, 128>}, {pipeline_mode = #tpu.pipeline_mode<synchronous>, transform_indices = @transform_4, window_bounds = array<i64: 1, 128>}, {pipeline_mode = #tpu.pipeline_mode<synchronous>, transform_indices = @transform_5, window_bounds = array<i64: 128, 4>}, {pipeline_mode = #tpu.pipeline_mode<synchronous>, transform_indices = @transform_6, window_bounds = array<i64: 1, 4>}, {transform_indices = @transform_7, window_bounds = array<i64: 8, 4>}]} {
    %c0 = arith.constant 0 : index
    %c0_0 = arith.constant 0 : index
    %0 = vector.load %arg1[%c0, %c0_0] : memref<8x72xf32, #tpu.memory_space<vmem>>, vector<8x72xf32>
    %c0_1 = arith.constant 0 : index
    %c0_2 = arith.constant 0 : index
    %1 = vector.load %arg2[%c0_1, %c0_2] : memref<72x128xf32, #tpu.memory_space<vmem>>, vector<72x128xf32>
    %cst = arith.constant dense<0.000000e+00> : vector<8x128xf32>
    %2 = tpu.matmul %0, %1, %cst {dimension_numbers = #tpu.dot_dimension_numbers<[1], [0], [0], [1], [0, 0, 1, 1], [], []>} : vector<8x72xf32>, vector<72x128xf32>, vector<8x128xf32> -> vector<8x128xf32>
    %c0_3 = arith.constant 0 : index
    %c0_4 = arith.constant 0 : index
    %3 = vector.load %arg3[%c0_3, %c0_4] : memref<1x128xf32, #tpu.memory_space<vmem>>, vector<1x128xf32>
    %4 = vector.broadcast %3 : vector<1x128xf32> to vector<8x128xf32>
    %5 = arith.addf %2, %4 : vector<8x128xf32>
    %cst_5 = arith.constant 0.000000e+00 : f32
    %6 = vector.broadcast %cst_5 : f32 to vector<8x128xf32>
    %7 = arith.maximumf %5, %6 : vector<8x128xf32>
    %c0_6 = arith.constant 0 : index
    %c0_7 = arith.constant 0 : index
    %8 = vector.load %arg4[%c0_6, %c0_7] : memref<128x128xf32, #tpu.memory_space<vmem>>, vector<128x128xf32>
    %cst_8 = arith.constant dense<0.000000e+00> : vector<8x128xf32>
    %9 = tpu.matmul %7, %8, %cst_8 {dimension_numbers = #tpu.dot_dimension_numbers<[1], [0], [0], [1], [0, 0, 1, 1], [], []>} : vector<8x128xf32>, vector<128x128xf32>, vector<8x128xf32> -> vector<8x128xf32>
    %c0_9 = arith.constant 0 : index
    %c0_10 = arith.constant 0 : index
    %10 = vector.load %arg5[%c0_9, %c0_10] : memref<1x128xf32, #tpu.memory_space<vmem>>, vector<1x128xf32>
    %11 = vector.broadcast %10 : vector<1x128xf32> to vector<8x128xf32>
    %12 = arith.addf %9, %11 : vector<8x128xf32>
    %cst_11 = arith.constant 0.000000e+00 : f32
    %13 = vector.broadcast %cst_11 : f32 to vector<8x128xf32>
    %14 = arith.maximumf %12, %13 : vector<8x128xf32>
    %c0_12 = arith.constant 0 : index
    %c0_13 = arith.constant 0 : index
    %15 = vector.load %arg6[%c0_12, %c0_13] : memref<128x4xf32, #tpu.memory_space<vmem>>, vector<128x4xf32>
    %cst_14 = arith.constant dense<0.000000e+00> : vector<8x4xf32>
    %16 = tpu.matmul %14, %15, %cst_14 {dimension_numbers = #tpu.dot_dimension_numbers<[1], [0], [0], [1], [0, 0, 1, 1], [], []>} : vector<8x128xf32>, vector<128x4xf32>, vector<8x4xf32> -> vector<8x4xf32>
    %c0_15 = arith.constant 0 : index
    %c0_16 = arith.constant 0 : index
    %17 = vector.load %arg7[%c0_15, %c0_16] : memref<1x4xf32, #tpu.memory_space<vmem>>, vector<1x4xf32>
    %18 = vector.broadcast %17 : vector<1x4xf32> to vector<8x4xf32>
    %19 = arith.addf %16, %18 : vector<8x4xf32>
    %20 = math.exp %19 : vector<8x4xf32>
    %c0_17 = arith.constant 0 : index
    %c0_18 = arith.constant 0 : index
    %21 = vector.load %arg8[%c0_17, %c0_18] : memref<8x4xf32, #tpu.memory_space<vmem>>, vector<8x4xf32>
    tpu.vector_store %arg8[%c0_17, %c0_18], %20 {strides = array<i32>} : memref<8x4xf32, #tpu.memory_space<vmem>>, vector<8x4xf32>,
    return
  }
  func.func @transform_0(%arg0: i32) -> (i32, i32) {
    %c0_i32 = arith.constant 0 : i32
    %c0_i32_0 = arith.constant 0 : i32
    return %arg0, %c0_i32 : i32, i32
  }
  func.func @transform_1(%arg0: i32) -> (i32, i32) {
    %c0_i32 = arith.constant 0 : i32
    %c0_i32_0 = arith.constant 0 : i32
    %c0_i32_1 = arith.constant 0 : i32
    return %c0_i32, %c0_i32_0 : i32, i32
  }
  func.func @transform_2(%arg0: i32) -> (i32, i32) {
    %c0_i32 = arith.constant 0 : i32
    %c0_i32_0 = arith.constant 0 : i32
    %c0_i32_1 = arith.constant 0 : i32
    return %c0_i32, %c0_i32_0 : i32, i32
  }
  func.func @transform_3(%arg0: i32) -> (i32, i32) {
    %c0_i32 = arith.constant 0 : i32
    %c0_i32_0 = arith.constant 0 : i32
    %c0_i32_1 = arith.constant 0 : i32
    return %c0_i32, %c0_i32_0 : i32, i32
  }
  func.func @transform_4(%arg0: i32) -> (i32, i32) {
    %c0_i32 = arith.constant 0 : i32
    %c0_i32_0 = arith.constant 0 : i32
    %c0_i32_1 = arith.constant 0 : i32
    return %c0_i32, %c0_i32_0 : i32, i32
  }
  func.func @transform_5(%arg0: i32) -> (i32, i32) {
    %c0_i32 = arith.constant 0 : i32
    %c0_i32_0 = arith.constant 0 : i32
    %c0_i32_1 = arith.constant 0 : i32
    return %c0_i32, %c0_i32_0 : i32, i32
  }
  func.func @transform_6(%arg0: i32) -> (i32, i32) {
    %c0_i32 = arith.constant 0 : i32
    %c0_i32_0 = arith.constant 0 : i32
    %c0_i32_1 = arith.constant 0 : i32
    return %c0_i32, %c0_i32_0 : i32, i32
  }
  func.func @transform_7(%arg0: i32) -> (i32, i32) {
    %c0_i32 = arith.constant 0 : i32
    %c0_i32_0 = arith.constant 0 : i32
    return %arg0, %c0_i32 : i32, i32
  }
}

module attributes {stable_mosaic.version = 11 : i64} {
  func.func @_l2sq_mlp_kernel(%arg0: i32, %arg1: memref<8x72xf32, #tpu.memory_space<vmem>>, %arg2: memref<72x128xf32, #tpu.memory_space<vmem>>, %arg3: memref<1x128xf32, #tpu.memory_space<vmem>>, %arg4: memref<128x128xf32, #tpu.memory_space<vmem>>, %arg5: memref<1x128xf32, #tpu.memory_space<vmem>>, %arg6: memref<128x4xf32, #tpu.memory_space<vmem>>, %arg7: memref<1x4xf32, #tpu.memory_space<vmem>>, %arg8: memref<8x4xf32, #tpu.memory_space<vmem>>) attributes {dimension_semantics = [#tpu.dimension_semantics<parallel>], iteration_bounds = array<i64: 1>, scalar_prefetch = 0 : i64, scratch_operands = 0 : i64, tpu.core_type = #tpu.core_type<tc>, window_params = [{transform_indices = @transform_0, window_bounds = array<i64: 8, 72>}, {pipeline_mode = #tpu.pipeline_mode<synchronous>, transform_indices = @transform_1, window_bounds = array<i64: 72, 128>}, {pipeline_mode = #tpu.pipeline_mode<synchronous>, transform_indices = @transform_2, window_bounds = array<i64: 1, 128>}, {pipeline_mode = #tpu.pipeline_mode<synchronous>, transform_indices = @transform_3, window_bounds = array<i64: 128, 128>}, {pipeline_mode = #tpu.pipeline_mode<synchronous>, transform_indices = @transform_4, window_bounds = array<i64: 1, 128>}, {pipeline_mode = #tpu.pipeline_mode<synchronous>, transform_indices = @transform_5, window_bounds = array<i64: 128, 4>}, {pipeline_mode = #tpu.pipeline_mode<synchronous>, transform_indices = @transform_6, window_bounds = array<i64: 1, 4>}, {transform_indices = @transform_7, window_bounds = array<i64: 8, 4>}]} {
    %c0 = arith.constant 0 : index
    %c0_0 = arith.constant 0 : index
    %0 = vector.load %arg1[%c0, %c0_0] : memref<8x72xf32, #tpu.memory_space<vmem>>, vector<8x72xf32>
    %c0_1 = arith.constant 0 : index
    %c0_2 = arith.constant 0 : index
    %1 = vector.load %arg2[%c0_1, %c0_2] : memref<72x128xf32, #tpu.memory_space<vmem>>, vector<72x128xf32>
    %cst = arith.constant dense<0.000000e+00> : vector<8x128xf32>
    %2 = tpu.matmul %0, %1, %cst {dimension_numbers = #tpu.dot_dimension_numbers<[1], [0], [0], [1], [0, 0, 1, 1], [], []>} : vector<8x72xf32>, vector<72x128xf32>, vector<8x128xf32> -> vector<8x128xf32>
    %c0_3 = arith.constant 0 : index
    %c0_4 = arith.constant 0 : index
    %3 = vector.load %arg3[%c0_3, %c0_4] : memref<1x128xf32, #tpu.memory_space<vmem>>, vector<1x128xf32>
    %4 = vector.broadcast %3 : vector<1x128xf32> to vector<8x128xf32>
    %5 = arith.addf %2, %4 : vector<8x128xf32>
    %cst_5 = arith.constant 0.000000e+00 : f32
    %6 = vector.broadcast %cst_5 : f32 to vector<8x128xf32>
    %7 = arith.maximumf %5, %6 : vector<8x128xf32>
    %c0_6 = arith.constant 0 : index
    %c0_7 = arith.constant 0 : index
    %8 = vector.load %arg4[%c0_6, %c0_7] : memref<128x128xf32, #tpu.memory_space<vmem>>, vector<128x128xf32>
    %cst_8 = arith.constant dense<0.000000e+00> : vector<8x128xf32>
    %9 = tpu.matmul %7, %8, %cst_8 {dimension_numbers = #tpu.dot_dimension_numbers<[1], [0], [0], [1], [0, 0, 1, 1], [], []>} : vector<8x128xf32>, vector<128x128xf32>, vector<8x128xf32> -> vector<8x128xf32>
    %c0_9 = arith.constant 0 : index
    %c0_10 = arith.constant 0 : index
    %10 = vector.load %arg5[%c0_9, %c0_10] : memref<1x128xf32, #tpu.memory_space<vmem>>, vector<1x128xf32>
    %11 = vector.broadcast %10 : vector<1x128xf32> to vector<8x128xf32>
    %12 = arith.addf %9, %11 : vector<8x128xf32>
    %cst_11 = arith.constant 0.000000e+00 : f32
    %13 = vector.broadcast %cst_11 : f32 to vector<8x128xf32>
    %14 = arith.maximumf %12, %13 : vector<8x128xf32>
    %c0_12 = arith.constant 0 : index
    %c0_13 = arith.constant 0 : index
    %15 = vector.load %arg6[%c0_12, %c0_13] : memref<128x4xf32, #tpu.memory_space<vmem>>, vector<128x4xf32>
    %cst_14 = arith.constant dense<0.000000e+00> : vector<8x4xf32>
    %16 = tpu.matmul %14, %15, %cst_14 {dimension_numbers = #tpu.dot_dimension_numbers<[1], [0], [0], [1], [0, 0, 1, 1], [], []>} : vector<8x128xf32>, vector<128x4xf32>, vector<8x4xf32> -> vector<8x4xf32>
    %c0_15 = arith.constant 0 : index
    %c0_16 = arith.constant 0 : index
    %17 = vector.load %arg7[%c0_15, %c0_16] : memref<1x4xf32, #tpu.memory_space<vmem>>, vector<1x4xf32>
    %18 = vector.broadcast %17 : vector<1x4xf32> to vector<8x4xf32>
    %19 = arith.addf %16, %18 : vector<8x4xf32>
    %20 = math.exp %19 : vector<8x4xf32>
    %c0_17 = arith.constant 0 : index
    %c0_18 = arith.constant 0 : index
    %21 = vector.load %arg8[%c0_17, %c0_18] : memref<8x4xf32, #tpu.memory_space<vmem>>, vector<8x4xf32>
    tpu.vector_store %arg8[%c0_17, %c0_18], %20 {strides = array<i32>} : memref<8x4xf32, #tpu.memory_space<vmem>>, vector<8x4xf32>,
    return
  }
  func.func @transform_0(%arg0: i32) -> (i32, i32) {
    %c0_i32 = arith.constant 0 : i32
    %c0_i32_0 = arith.constant 0 : i32
    return %arg0, %c0_i32 : i32, i32
  }
  func.func @transform_1(%arg0: i32) -> (i32, i32) {
    %c0_i32 = arith.constant 0 : i32
    %c0_i32_0 = arith.constant 0 : i32
    %c0_i32_1 = arith.constant 0 : i32
    return %c0_i32, %c0_i32_0 : i32, i32
  }
  func.func @transform_2(%arg0: i32) -> (i32, i32) {
    %c0_i32 = arith.constant 0 : i32
    %c0_i32_0 = arith.constant 0 : i32
    %c0_i32_1 = arith.constant 0 : i32
    return %c0_i32, %c0_i32_0 : i32, i32
  }
  func.func @transform_3(%arg0: i32) -> (i32, i32) {
    %c0_i32 = arith.constant 0 : i32
    %c0_i32_0 = arith.constant 0 : i32
    %c0_i32_1 = arith.constant 0 : i32
    return %c0_i32, %c0_i32_0 : i32, i32
  }
  func.func @transform_4(%arg0: i32) -> (i32, i32) {
    %c0_i32 = arith.constant 0 : i32
    %c0_i32_0 = arith.constant 0 : i32
    %c0_i32_1 = arith.constant 0 : i32
    return %c0_i32, %c0_i32_0 : i32, i32
  }
  func.func @transform_5(%arg0: i32) -> (i32, i32) {
    %c0_i32 = arith.constant 0 : i32
    %c0_i32_0 = arith.constant 0 : i32
    %c0_i32_1 = arith.constant 0 : i32
    return %c0_i32, %c0_i32_0 : i32, i32
  }
  func.func @transform_6(%arg0: i32) -> (i32, i32) {
    %c0_i32 = arith.constant 0 : i32
    %c0_i32_0 = arith.constant 0 : i32
    %c0_i32_1 = arith.constant 0 : i32
    return %c0_i32, %c0_i32_0 : i32, i32
  }
  func.func @transform_7(%arg0: i32) -> (i32, i32) {
    %c0_i32 = arith.constant 0 : i32
    %c0_i32_0 = arith.constant 0 : i32
    return %arg0, %c0_i32 : i32, i32
  }
}

</mosaic_0001>

<bundles_post_ra>
// kernel: tpu_custom_call.1
= control target key start
LH: loop header
LB: loop body
LE: loop exit
PB: predicated region body
PF: predicated region fallthrough
CT: control target
= control target key end

     0   :  { %12 = vsyncpa [#allocation3], 0  ;;  %s739_s0 = inlined_call_operand.vmem [shape: f32[8,72], index: 0, kind: input, shape index: {}]   ;;  %s740_s1 = inlined_call_operand.hbm [shape: f32[72,128], index: 1, kind: input, shape index: {}]   ;;  %s741_s2 = inlined_call_operand.vmem [shape: f32[1,128], index: 2, kind: input, shape index: {}]   ;;  %s742_s3 = inlined_call_operand.vmem [shape: f32[128,128], index: 3, kind: input, shape index: {}]   ;;  %s743_s4 = inlined_call_operand.hbm [shape: f32[1,128], index: 4, kind: input, shape index: {}]   ;;  %s744_s5 = inlined_call_operand.vmem [shape: f32[128,4], index: 5, kind: input, shape index: {}]   ;;  %s745_s6 = inlined_call_operand.vmem [shape: f32[1,4], index: 6, kind: input, shape index: {}]   ;;  %s746_s7 = inlined_call_operand.vmem [shape: f32[8,4], index: 7, kind: output, shape index: {}]  }
   0x1   :  { %13 = vsyncpa [#allocation5], 0  ;;  %s532_s24 = smov [#allocation2]  }
   0x2   :  { %s21_s25 = sshll.u32 %s532_s24, 4  ;;  %s22_s25 = int_to_ptr.vmem [resolvable:$true] %s21_s25 }
   0x3   :  { %s496_s26 = scalar_lea.vmem %s22_s25, 1152  ;;  %p501_p1 = scmp.lt.s32.totalorder %s22_s25, %s22_s25 }
   0x4   :  { %p497_p0 = scmp.ne.s32.totalorder %s22_s25, %s496_s26  ;;  %p502_p2 = scmp.lt.s32.totalorder %s496_s26, %s496_s26 }
   0x6   :  { %p503_p3 = por %p502_p2, %p501_p1 }
   0x8   :  { %p504_p4 = pnand %p503_p3, %p497_p0 }
   0xa   :  { %507 = shalt.err (!%p504_p4)
}
   0xb   :  { %s533_s27 = smov 128   ;;  %s534_s28 = smov 8  }
   0xc   :  { %27 = dma.hbm_to_vmem [thread:$0]  %s740_s1, 1152, %s22_s25, [#allocation3], %s533_s27, %s533_s27, %s534_s28  }
   0xd   :  { %s535_s8 = smov [#allocation4]  }
   0xe   :  { %s38_s9 = sshll.u32 %s535_s8, 4  ;;  %s39_s9 = int_to_ptr.vmem [resolvable:$true] %s38_s9 }
   0xf   :  { %s516_s10 = scalar_lea.vmem %s39_s9, 16  ;;  %s520_s11 = scalar_lea.vmem %s39_s9, 32 }
  0x10   :  { %p517_p5 = scmp.ne.s32.totalorder %s39_s9, %s516_s10  ;;  %p521_p6 = scmp.lt.s32.totalorder %s39_s9, %s39_s9 }
  0x11   :  { %p522_p7 = scmp.lt.s32.totalorder %s520_s11, %s516_s10 }
  0x13   :  { %p523_p8 = por %p522_p7, %p521_p6 }
  0x15   :  { %p524_p9 = pnand %p523_p8, %p517_p5 }
  0x17   :  { %527 = shalt.err (!%p524_p9)
}
  0x18   :  { %41 = dma.hbm_to_vmem [thread:$0]  %s743_s4, 16, %s39_s9, [#allocation5]  }
  0x19   :  { %528 = dma.done.wait [#allocation3], 1152  }
  0x1a   :  { %529 = vsyncadd [#allocation3], 4294966144 }
  0x1b   :  { %530 = dma.done.wait [#allocation5], 16  }
  0x1c   :  { %531 = vsyncadd [#allocation5], 4294967280  ;;  %v536_v0 = vmov 0.0   ;;  %vm537_vm0 = vmmov 0   ;;  %v61_v1 = vld [vmem:[#allocation2 + $0x40] sm:$0xff]  ;;  %v60_v2 = vld [vmem:[#allocation2 + $0x38] sm:$0xff] }
  0x1d   :  { %389 = vmatprep.subr.mxu0 %v536_v0  ;;  %407 = vmatprep.mubr.msk.f32.mxu0 %vm537_vm0, %v536_v0  ;;  %v59_v3 = vld [vmem:[#allocation2 + $0x30] sm:$0xff]  ;;  %v159_v4 = vld [vmem:[%s742_s3 + $0x78] sm:$0xff]  ;;  %v58_v6 = vld [vmem:[#allocation2 + $0x28] sm:$0xff]  ;;  %vm69_vm1 = vcmask 588800   ;;  %vm333_vm2 = vcmask 31744  }
  0x1e   :  { %410 = vmatprep.subr.mxu1 %v536_v0  ;;  %442 = vmatprep.mubr.msk.f32.mxu1 %vm537_vm0, %v536_v0  ;;  %v158_v5 = vld [vmem:[%s742_s3 + $0x70] sm:$0xff]  ;;  %v157_v7 = vld [vmem:[%s742_s3 + $0x68] sm:$0xff]  ;;  %v57_v8 = vld [vmem:[#allocation2 + $0x20] sm:$0xff] }
  0x1f   :  { %390 = vmatpush3.msra.mxu0 %v61_v1  ;;  %411 = vmatpush3.msra.mxu1 %v159_v4  ;;  %v156_v9 = vld [vmem:[%s742_s3 + $0x60] sm:$0xff]  ;;  %v56_v10 = vld [vmem:[#allocation2 + $0x18] sm:$0xff]  ;;  %v55_v12 = vld [vmem:[#allocation2 + $0x10] sm:$0xff] }
  0x20   :  { %391 = vmatprep.subr.mxu0 %v536_v0  ;;  %412 = vmatprep.subr.mxu1 %v536_v0  ;;  %v155_v11 = vld [vmem:[%s742_s3 + $0x58] sm:$0xff]  ;;  %v154_v13 = vld [vmem:[%s742_s3 + $0x50] sm:$0xff]  ;;  %v54_v14 = vld [vmem:[#allocation2 + $0x8] sm:$0xff] }
  0x21   :  { %392 = vmatpush3.msra.mxu0 %v60_v2  ;;  %413 = vmatpush3.msra.mxu1 %v158_v5  ;;  %v153_v15 = vld [vmem:[%s742_s3 + $0x48] sm:$0xff]  ;;  %v53_v16 = vld [vmem:[#allocation2] sm:$0xff]  ;;  %v151_v19 = vld [vmem:[%s742_s3 + $0x38] sm:$0xff] }
  0x22   :  { %393 = vmatprep.subr.mxu0 %v536_v0  ;;  %414 = vmatprep.subr.mxu1 %v536_v0  ;;  %v52_v17 = vld [vmem:[%s739_s0] sm:$0xff]  ;;  %v150_v20 = vld [vmem:[%s742_s3 + $0x30] sm:$0xff]  ;;  %v149_v21 = vld [vmem:[%s742_s3 + $0x28] sm:$0xff] }
  0x23   :  { %394 = vmatpush3.msra.mxu0 %v59_v3  ;;  %415 = vmatpush3.msra.mxu1 %v157_v7  ;;  %v152_v18 = vld [vmem:[%s742_s3 + $0x40] sm:$0xff]  ;;  %v147_v23 = vld [vmem:[%s742_s3 + $0x18] sm:$0xff]  ;;  %v146_v24 = vld [vmem:[%s742_s3 + $0x10] sm:$0xff] }
  0x24   :  { %395 = vmatprep.subr.mxu0 %v536_v0  ;;  %416 = vmatprep.subr.mxu1 %v536_v0  ;;  %v148_v22 = vld [vmem:[%s742_s3 + $0x20] sm:$0xff]  ;;  %v145_v25 = vld [vmem:[%s742_s3 + $0x8] sm:$0xff]  ;;  %v253_v27 = vld [vmem:[%s744_s5 + $0x78] sm:$0xff] }
  0x25   :  { %396 = vmatpush3.msra.mxu0 %v58_v6  ;;  %417 = vmatpush3.msra.mxu1 %v156_v9  ;;  %v144_v26 = vld [vmem:[%s742_s3] sm:$0xff]  ;;  %v252_v28 = vld [vmem:[%s744_s5 + $0x70] sm:$0xff]  ;;  %v251_v29 = vld [vmem:[%s744_s5 + $0x68] sm:$0xff] }
  0x26   :  { %397 = vmatprep.subr.mxu0 %v536_v0  ;;  %418 = vmatprep.subr.mxu1 %v536_v0  ;;  %v250_v30 = vld [vmem:[%s744_s5 + $0x60] sm:$0xff]  ;;  %v249_v31 = vld [vmem:[%s744_s5 + $0x58] sm:$0xff]  ;;  %v248_v32 = vld [vmem:[%s744_s5 + $0x50] sm:$0xff] }
  0x27   :  { %398 = vmatpush3.msra.mxu0 %v57_v8  ;;  %419 = vmatpush3.msra.mxu1 %v155_v11  ;;  %v247_v33 = vld [vmem:[%s744_s5 + $0x48] sm:$0xff]  ;;  %v246_v34 = vld [vmem:[%s744_s5 + $0x40] sm:$0xff]  ;;  %v245_v35 = vld [vmem:[%s744_s5 + $0x38] sm:$0xff] }
  0x28   :  { %399 = vmatprep.subr.mxu0 %v536_v0  ;;  %420 = vmatprep.subr.mxu1 %v536_v0  ;;  %v244_v36 = vld [vmem:[%s744_s5 + $0x30] sm:$0xff]  ;;  %v243_v37 = vld [vmem:[%s744_s5 + $0x28] sm:$0xff]  ;;  %v242_v38 = vld [vmem:[%s744_s5 + $0x20] sm:$0xff] }
  0x29   :  { %400 = vmatpush3.msra.mxu0 %v56_v10  ;;  %421 = vmatpush3.msra.mxu1 %v154_v13  ;;  %v241_v39 = vld [vmem:[%s744_s5 + $0x18] sm:$0xff]  ;;  %v341_v40 = vld [vmem:[%s741_s2] ss:$0 sm:$0xff]  ;;  %v240_v45 = vld [vmem:[%s744_s5 + $0x10] sm:$0xff] }
  0x2a   :  { %401 = vmatprep.subr.mxu0 %v536_v0  ;;  %422 = vmatprep.subr.mxu1 %v536_v0  ;;  %v239_v46 = vld [vmem:[%s744_s5 + $0x8] sm:$0xff]  ;;  %v238_v47 = vld [vmem:[%s744_s5] sm:$0xff] }
  0x2b   :  { %402 = vmatpush3.msra.mxu0 %v55_v12  ;;  %423 = vmatpush3.msra.mxu1 %v153_v15  ;;  %v343_v48 = vld [vmem:[#allocation4] ss:$0 sm:$0xff]  ;;  %v344_v53 = vld [vmem:[%s745_s6] ss:$0 sm:$0xff] }
  0x2c   :  { %403 = vmatprep.subr.mxu0 %v536_v0  ;;  %424 = vmatprep.subr.mxu1 %v536_v0 }
  0x2d   :  { %404 = vmatpush3.msra.mxu0 %v54_v14  ;;  %425 = vmatpush3.msra.mxu1 %v152_v18 }
  0x2e   :  { %405 = vmatprep.subr.mxu0 %v536_v0  ;;  %426 = vmatprep.subr.mxu1 %v536_v0 }
  0x2f   :  { %406 = vmatpush3.msra.mxu0 %v53_v16  ;;  %427 = vmatpush3.msra.mxu1 %v151_v19 }
  0x30   :  { %408 = vmatmul.mubr.msk.f32.vlgmr.msra.gmra.mxu0 %vm69_vm1, %v52_v17  ;;  %445 = vmatprep.subr.mxu0 %v536_v0 }
  0x31   :  { %477 = vmatprep.mubr.msk.f32.mxu0 %vm537_vm0, %v536_v0  ;;  %428 = vmatprep.subr.mxu1 %v536_v0 }
  0x32   :  { %429 = vmatpush3.msra.mxu1 %v150_v20  ;;  %446 = vmatpush3.msra.mxu0 %v253_v27 }
  0x33   :  { %430 = vmatprep.subr.mxu1 %v536_v0  ;;  %447 = vmatprep.subr.mxu0 %v536_v0 }
  0x34   :  { %431 = vmatpush3.msra.mxu1 %v149_v21  ;;  %448 = vmatpush3.msra.mxu0 %v252_v28 }
  0x35   :  { %432 = vmatprep.subr.mxu1 %v536_v0  ;;  %449 = vmatprep.subr.mxu0 %v536_v0 }
  0x36   :  { %433 = vmatpush3.msra.mxu1 %v148_v22  ;;  %450 = vmatpush3.msra.mxu0 %v251_v29 }
  0x37   :  { %434 = vmatprep.subr.mxu1 %v536_v0  ;;  %451 = vmatprep.subr.mxu0 %v536_v0 }
  0x38   :  { %435 = vmatpush3.msra.mxu1 %v147_v23  ;;  %452 = vmatpush3.msra.mxu0 %v250_v30 }
  0x39   :  { %436 = vmatprep.subr.mxu1 %v536_v0  ;;  %453 = vmatprep.subr.mxu0 %v536_v0 }
  0x3a   :  { %437 = vmatpush3.msra.mxu1 %v146_v24  ;;  %454 = vmatpush3.msra.mxu0 %v249_v31 }
  0x3b   :  { %438 = vmatprep.subr.mxu1 %v536_v0  ;;  %455 = vmatprep.subr.mxu0 %v536_v0 }
  0x3c   :  { %439 = vmatpush3.msra.mxu1 %v145_v25  ;;  %456 = vmatpush3.msra.mxu0 %v248_v32 }
  0x3d   :  { %440 = vmatprep.subr.mxu1 %v536_v0  ;;  %457 = vmatprep.subr.mxu0 %v536_v0 }
  0x3e   :  { %441 = vmatpush3.msra.mxu1 %v144_v26  ;;  %458 = vmatpush3.msra.mxu0 %v247_v33 }
  0x3f   :  { %459 = vmatprep.subr.mxu0 %v536_v0 }
  0x40   :  { %460 = vmatpush3.msra.mxu0 %v246_v34 }
  0x41   :  { %461 = vmatprep.subr.mxu0 %v536_v0 }
  0x42   :  { %462 = vmatpush3.msra.mxu0 %v245_v35 }
  0x43   :  { %463 = vmatprep.subr.mxu0 %v536_v0 }
  0x44   :  { %464 = vmatpush3.msra.mxu0 %v244_v36 }
  0x45   :  { %465 = vmatprep.subr.mxu0 %v536_v0 }
  0x46   :  { %466 = vmatpush3.msra.mxu0 %v243_v37 }
  0x47   :  { %467 = vmatprep.subr.mxu0 %v536_v0 }
  0x48   :  { %468 = vmatpush3.msra.mxu0 %v242_v38 }
  0x49   :  { %469 = vmatprep.subr.mxu0 %v536_v0 }
  0x4a   :  { %470 = vmatpush3.msra.mxu0 %v241_v39 }
  0x4b   :  { %471 = vmatprep.subr.mxu0 %v536_v0 }
  0x4c   :  { %472 = vmatpush3.msra.mxu0 %v240_v45 }
  0x4d   :  { %473 = vmatprep.subr.mxu0 %v536_v0 }
  0x4e   :  { %474 = vmatpush3.msra.mxu0 %v239_v46 }
  0x4f   :  { %475 = vmatprep.subr.mxu0 %v536_v0 }
  0x50   :  { %476 = vmatpush3.msra.mxu0 %v238_v47 }
  0xf0   :  { %v139_v41 = vpop.f32.mrf.mxu0 }
  0xf1   :  { %v140_v42 = vadd.f32 %v341_v40, %v139_v41 }
  0xf2   :  { %v409_v43 = vpop.f32.mrf.mxu0 }
  0xf3   :  { %v143_v44 = vmax.f32 %v140_v42, 0.0 }
  0xf5   :  { %443 = vmatmul.mubr.f32.vlgmr.msra.gmra.mxu1 %v143_v44 }
 0x1b5   :  { %v233_v49 = vpop.f32.mrf.mxu1 }
 0x1b6   :  { %v234_v50 = vadd.f32 %v343_v48, %v233_v49 }
 0x1b7   :  { %v444_v51 = vpop.f32.mrf.mxu1 }
 0x1b8   :  { %v237_v52 = vmax.f32 %v234_v50, 0.0 }
 0x1ba   :  { %478 = vmatmul.mubr.f32.vlgmr.msra.gmra.mxu0 %v237_v52 }
 0x27a   :  { %v327_v54 = vpop.f32.mrf.mxu0 }
 0x27b   :  { %v328_v55 = vadd.f32 %v344_v53, %v327_v54 }
 0x27c   :  { %v479_v56 = vpop.f32.mrf.mxu0 }
 0x27d   :  { %v331_v57 = vmul.f32 1.442695, %v328_v55 }
 0x27f   :  { %486 = vpow2.f32 %v331_v57 }
 0x28c   :  { %v487_v58 = vpop.eup %486 }
 0x28d   :  { %334 = vst.msk [vmem:[%s746_s7] sm:$0xff] %vm333_vm2, %v487_v58 }
 0x28e   :  { %339 = vsyncpa [#allocation3], 1 }
 0x28f   :  { %340 = vsyncpa [#allocation5], 1 }

// kernel: tpu_custom_call.1
= control target key start
LH: loop header
LB: loop body
LE: loop exit
PB: predicated region body
PF: predicated region fallthrough
CT: control target
= control target key end

     0   :  { %12 = vsyncpa [#allocation3], 0  ;;  %s739_s0 = inlined_call_operand.vmem [shape: f32[8,72], index: 0, kind: input, shape index: {}]   ;;  %s740_s1 = inlined_call_operand.hbm [shape: f32[72,128], index: 1, kind: input, shape index: {}]   ;;  %s741_s2 = inlined_call_operand.vmem [shape: f32[1,128], index: 2, kind: input, shape index: {}]   ;;  %s742_s3 = inlined_call_operand.vmem [shape: f32[128,128], index: 3, kind: input, shape index: {}]   ;;  %s743_s4 = inlined_call_operand.hbm [shape: f32[1,128], index: 4, kind: input, shape index: {}]   ;;  %s744_s5 = inlined_call_operand.vmem [shape: f32[128,4], index: 5, kind: input, shape index: {}]   ;;  %s745_s6 = inlined_call_operand.vmem [shape: f32[1,4], index: 6, kind: input, shape index: {}]   ;;  %s746_s7 = inlined_call_operand.vmem [shape: f32[8,4], index: 7, kind: output, shape index: {}]  }
   0x1   :  { %13 = vsyncpa [#allocation5], 0  ;;  %s532_s24 = smov [#allocation2]  }
   0x2   :  { %s21_s25 = sshll.u32 %s532_s24, 4  ;;  %s22_s25 = int_to_ptr.vmem [resolvable:$true] %s21_s25 }
   0x3   :  { %s496_s26 = scalar_lea.vmem %s22_s25, 1152  ;;  %p501_p1 = scmp.lt.s32.totalorder %s22_s25, %s22_s25 }
   0x4   :  { %p497_p0 = scmp.ne.s32.totalorder %s22_s25, %s496_s26  ;;  %p502_p2 = scmp.lt.s32.totalorder %s496_s26, %s496_s26 }
   0x6   :  { %p503_p3 = por %p502_p2, %p501_p1 }
   0x8   :  { %p504_p4 = pnand %p503_p3, %p497_p0 }
   0xa   :  { %507 = shalt.err (!%p504_p4)
}
   0xb   :  { %s533_s27 = smov 128   ;;  %s534_s28 = smov 8  }
   0xc   :  { %27 = dma.hbm_to_vmem [thread:$0]  %s740_s1, 1152, %s22_s25, [#allocation3], %s533_s27, %s533_s27, %s534_s28  }
   0xd   :  { %s535_s8 = smov [#allocation4]  }
   0xe   :  { %s38_s9 = sshll.u32 %s535_s8, 4  ;;  %s39_s9 = int_to_ptr.vmem [resolvable:$true] %s38_s9 }
   0xf   :  { %s516_s10 = scalar_lea.vmem %s39_s9, 16  ;;  %s520_s11 = scalar_lea.vmem %s39_s9, 32 }
  0x10   :  { %p517_p5 = scmp.ne.s32.totalorder %s39_s9, %s516_s10  ;;  %p521_p6 = scmp.lt.s32.totalorder %s39_s9, %s39_s9 }
  0x11   :  { %p522_p7 = scmp.lt.s32.totalorder %s520_s11, %s516_s10 }
  0x13   :  { %p523_p8 = por %p522_p7, %p521_p6 }
  0x15   :  { %p524_p9 = pnand %p523_p8, %p517_p5 }
  0x17   :  { %527 = shalt.err (!%p524_p9)
}
  0x18   :  { %41 = dma.hbm_to_vmem [thread:$0]  %s743_s4, 16, %s39_s9, [#allocation5]  }
  0x19   :  { %528 = dma.done.wait [#allocation3], 1152  }
  0x1a   :  { %529 = vsyncadd [#allocation3], 4294966144 }
  0x1b   :  { %530 = dma.done.wait [#allocation5], 16  }
  0x1c   :  { %531 = vsyncadd [#allocation5], 4294967280  ;;  %v536_v0 = vmov 0.0   ;;  %vm537_vm0 = vmmov 0   ;;  %v61_v1 = vld [vmem:[#allocation2 + $0x40] sm:$0xff]  ;;  %v60_v2 = vld [vmem:[#allocation2 + $0x38] sm:$0xff] }
  0x1d   :  { %389 = vmatprep.subr.mxu0 %v536_v0  ;;  %407 = vmatprep.mubr.msk.f32.mxu0 %vm537_vm0, %v536_v0  ;;  %v59_v3 = vld [vmem:[#allocation2 + $0x30] sm:$0xff]  ;;  %v159_v4 = vld [vmem:[%s742_s3 + $0x78] sm:$0xff]  ;;  %v58_v6 = vld [vmem:[#allocation2 + $0x28] sm:$0xff]  ;;  %vm69_vm1 = vcmask 588800   ;;  %vm333_vm2 = vcmask 31744  }
  0x1e   :  { %410 = vmatprep.subr.mxu1 %v536_v0  ;;  %442 = vmatprep.mubr.msk.f32.mxu1 %vm537_vm0, %v536_v0  ;;  %v158_v5 = vld [vmem:[%s742_s3 + $0x70] sm:$0xff]  ;;  %v157_v7 = vld [vmem:[%s742_s3 + $0x68] sm:$0xff]  ;;  %v57_v8 = vld [vmem:[#allocation2 + $0x20] sm:$0xff] }
  0x1f   :  { %390 = vmatpush3.msra.mxu0 %v61_v1  ;;  %411 = vmatpush3.msra.mxu1 %v159_v4  ;;  %v156_v9 = vld [vmem:[%s742_s3 + $0x60] sm:$0xff]  ;;  %v56_v10 = vld [vmem:[#allocation2 + $0x18] sm:$0xff]  ;;  %v55_v12 = vld [vmem:[#allocation2 + $0x10] sm:$0xff] }
  0x20   :  { %391 = vmatprep.subr.mxu0 %v536_v0  ;;  %412 = vmatprep.subr.mxu1 %v536_v0  ;;  %v155_v11 = vld [vmem:[%s742_s3 + $0x58] sm:$0xff]  ;;  %v154_v13 = vld [vmem:[%s742_s3 + $0x50] sm:$0xff]  ;;  %v54_v14 = vld [vmem:[#allocation2 + $0x8] sm:$0xff] }
  0x21   :  { %392 = vmatpush3.msra.mxu0 %v60_v2  ;;  %413 = vmatpush3.msra.mxu1 %v158_v5  ;;  %v153_v15 = vld [vmem:[%s742_s3 + $0x48] sm:$0xff]  ;;  %v53_v16 = vld [vmem:[#allocation2] sm:$0xff]  ;;  %v151_v19 = vld [vmem:[%s742_s3 + $0x38] sm:$0xff] }
  0x22   :  { %393 = vmatprep.subr.mxu0 %v536_v0  ;;  %414 = vmatprep.subr.mxu1 %v536_v0  ;;  %v52_v17 = vld [vmem:[%s739_s0] sm:$0xff]  ;;  %v150_v20 = vld [vmem:[%s742_s3 + $0x30] sm:$0xff]  ;;  %v149_v21 = vld [vmem:[%s742_s3 + $0x28] sm:$0xff] }
  0x23   :  { %394 = vmatpush3.msra.mxu0 %v59_v3  ;;  %415 = vmatpush3.msra.mxu1 %v157_v7  ;;  %v152_v18 = vld [vmem:[%s742_s3 + $0x40] sm:$0xff]  ;;  %v147_v23 = vld [vmem:[%s742_s3 + $0x18] sm:$0xff]  ;;  %v146_v24 = vld [vmem:[%s742_s3 + $0x10] sm:$0xff] }
  0x24   :  { %395 = vmatprep.subr.mxu0 %v536_v0  ;;  %416 = vmatprep.subr.mxu1 %v536_v0  ;;  %v148_v22 = vld [vmem:[%s742_s3 + $0x20] sm:$0xff]  ;;  %v145_v25 = vld [vmem:[%s742_s3 + $0x8] sm:$0xff]  ;;  %v253_v27 = vld [vmem:[%s744_s5 + $0x78] sm:$0xff] }
  0x25   :  { %396 = vmatpush3.msra.mxu0 %v58_v6  ;;  %417 = vmatpush3.msra.mxu1 %v156_v9  ;;  %v144_v26 = vld [vmem:[%s742_s3] sm:$0xff]  ;;  %v252_v28 = vld [vmem:[%s744_s5 + $0x70] sm:$0xff]  ;;  %v251_v29 = vld [vmem:[%s744_s5 + $0x68] sm:$0xff] }
  0x26   :  { %397 = vmatprep.subr.mxu0 %v536_v0  ;;  %418 = vmatprep.subr.mxu1 %v536_v0  ;;  %v250_v30 = vld [vmem:[%s744_s5 + $0x60] sm:$0xff]  ;;  %v249_v31 = vld [vmem:[%s744_s5 + $0x58] sm:$0xff]  ;;  %v248_v32 = vld [vmem:[%s744_s5 + $0x50] sm:$0xff] }
  0x27   :  { %398 = vmatpush3.msra.mxu0 %v57_v8  ;;  %419 = vmatpush3.msra.mxu1 %v155_v11  ;;  %v247_v33 = vld [vmem:[%s744_s5 + $0x48] sm:$0xff]  ;;  %v246_v34 = vld [vmem:[%s744_s5 + $0x40] sm:$0xff]  ;;  %v245_v35 = vld [vmem:[%s744_s5 + $0x38] sm:$0xff] }
  0x28   :  { %399 = vmatprep.subr.mxu0 %v536_v0  ;;  %420 = vmatprep.subr.mxu1 %v536_v0  ;;  %v244_v36 = vld [vmem:[%s744_s5 + $0x30] sm:$0xff]  ;;  %v243_v37 = vld [vmem:[%s744_s5 + $0x28] sm:$0xff]  ;;  %v242_v38 = vld [vmem:[%s744_s5 + $0x20] sm:$0xff] }
  0x29   :  { %400 = vmatpush3.msra.mxu0 %v56_v10  ;;  %421 = vmatpush3.msra.mxu1 %v154_v13  ;;  %v241_v39 = vld [vmem:[%s744_s5 + $0x18] sm:$0xff]  ;;  %v341_v40 = vld [vmem:[%s741_s2] ss:$0 sm:$0xff]  ;;  %v240_v45 = vld [vmem:[%s744_s5 + $0x10] sm:$0xff] }
  0x2a   :  { %401 = vmatprep.subr.mxu0 %v536_v0  ;;  %422 = vmatprep.subr.mxu1 %v536_v0  ;;  %v239_v46 = vld [vmem:[%s744_s5 + $0x8] sm:$0xff]  ;;  %v238_v47 = vld [vmem:[%s744_s5] sm:$0xff] }
  0x2b   :  { %402 = vmatpush3.msra.mxu0 %v55_v12  ;;  %423 = vmatpush3.msra.mxu1 %v153_v15  ;;  %v343_v48 = vld [vmem:[#allocation4] ss:$0 sm:$0xff]  ;;  %v344_v53 = vld [vmem:[%s745_s6] ss:$0 sm:$0xff] }
  0x2c   :  { %403 = vmatprep.subr.mxu0 %v536_v0  ;;  %424 = vmatprep.subr.mxu1 %v536_v0 }
  0x2d   :  { %404 = vmatpush3.msra.mxu0 %v54_v14  ;;  %425 = vmatpush3.msra.mxu1 %v152_v18 }
  0x2e   :  { %405 = vmatprep.subr.mxu0 %v536_v0  ;;  %426 = vmatprep.subr.mxu1 %v536_v0 }
  0x2f   :  { %406 = vmatpush3.msra.mxu0 %v53_v16  ;;  %427 = vmatpush3.msra.mxu1 %v151_v19 }
  0x30   :  { %408 = vmatmul.mubr.msk.f32.vlgmr.msra.gmra.mxu0 %vm69_vm1, %v52_v17  ;;  %445 = vmatprep.subr.mxu0 %v536_v0 }
  0x31   :  { %477 = vmatprep.mubr.msk.f32.mxu0 %vm537_vm0, %v536_v0  ;;  %428 = vmatprep.subr.mxu1 %v536_v0 }
  0x32   :  { %429 = vmatpush3.msra.mxu1 %v150_v20  ;;  %446 = vmatpush3.msra.mxu0 %v253_v27 }
  0x33   :  { %430 = vmatprep.subr.mxu1 %v536_v0  ;;  %447 = vmatprep.subr.mxu0 %v536_v0 }
  0x34   :  { %431 = vmatpush3.msra.mxu1 %v149_v21  ;;  %448 = vmatpush3.msra.mxu0 %v252_v28 }
  0x35   :  { %432 = vmatprep.subr.mxu1 %v536_v0  ;;  %449 = vmatprep.subr.mxu0 %v536_v0 }
  0x36   :  { %433 = vmatpush3.msra.mxu1 %v148_v22  ;;  %450 = vmatpush3.msra.mxu0 %v251_v29 }
  0x37   :  { %434 = vmatprep.subr.mxu1 %v536_v0  ;;  %451 = vmatprep.subr.mxu0 %v536_v0 }
  0x38   :  { %435 = vmatpush3.msra.mxu1 %v147_v23  ;;  %452 = vmatpush3.msra.mxu0 %v250_v30 }
  0x39   :  { %436 = vmatprep.subr.mxu1 %v536_v0  ;;  %453 = vmatprep.subr.mxu0 %v536_v0 }
  0x3a   :  { %437 = vmatpush3.msra.mxu1 %v146_v24  ;;  %454 = vmatpush3.msra.mxu0 %v249_v31 }
  0x3b   :  { %438 = vmatprep.subr.mxu1 %v536_v0  ;;  %455 = vmatprep.subr.mxu0 %v536_v0 }
  0x3c   :  { %439 = vmatpush3.msra.mxu1 %v145_v25  ;;  %456 = vmatpush3.msra.mxu0 %v248_v32 }
  0x3d   :  { %440 = vmatprep.subr.mxu1 %v536_v0  ;;  %457 = vmatprep.subr.mxu0 %v536_v0 }
  0x3e   :  { %441 = vmatpush3.msra.mxu1 %v144_v26  ;;  %458 = vmatpush3.msra.mxu0 %v247_v33 }
  0x3f   :  { %459 = vmatprep.subr.mxu0 %v536_v0 }
  0x40   :  { %460 = vmatpush3.msra.mxu0 %v246_v34 }
  0x41   :  { %461 = vmatprep.subr.mxu0 %v536_v0 }
  0x42   :  { %462 = vmatpush3.msra.mxu0 %v245_v35 }
  0x43   :  { %463 = vmatprep.subr.mxu0 %v536_v0 }
  0x44   :  { %464 = vmatpush3.msra.mxu0 %v244_v36 }
  0x45   :  { %465 = vmatprep.subr.mxu0 %v536_v0 }
  0x46   :  { %466 = vmatpush3.msra.mxu0 %v243_v37 }
  0x47   :  { %467 = vmatprep.subr.mxu0 %v536_v0 }
  0x48   :  { %468 = vmatpush3.msra.mxu0 %v242_v38 }
  0x49   :  { %469 = vmatprep.subr.mxu0 %v536_v0 }
  0x4a   :  { %470 = vmatpush3.msra.mxu0 %v241_v39 }
  0x4b   :  { %471 = vmatprep.subr.mxu0 %v536_v0 }
  0x4c   :  { %472 = vmatpush3.msra.mxu0 %v240_v45 }
  0x4d   :  { %473 = vmatprep.subr.mxu0 %v536_v0 }
  0x4e   :  { %474 = vmatpush3.msra.mxu0 %v239_v46 }
  0x4f   :  { %475 = vmatprep.subr.mxu0 %v536_v0 }
  0x50   :  { %476 = vmatpush3.msra.mxu0 %v238_v47 }
  0xf0   :  { %v139_v41 = vpop.f32.mrf.mxu0 }
  0xf1   :  { %v140_v42 = vadd.f32 %v341_v40, %v139_v41 }
  0xf2   :  { %v409_v43 = vpop.f32.mrf.mxu0 }
  0xf3   :  { %v143_v44 = vmax.f32 %v140_v42, 0.0 }
  0xf5   :  { %443 = vmatmul.mubr.f32.vlgmr.msra.gmra.mxu1 %v143_v44 }
 0x1b5   :  { %v233_v49 = vpop.f32.mrf.mxu1 }
 0x1b6   :  { %v234_v50 = vadd.f32 %v343_v48, %v233_v49 }
 0x1b7   :  { %v444_v51 = vpop.f32.mrf.mxu1 }
 0x1b8   :  { %v237_v52 = vmax.f32 %v234_v50, 0.0 }
 0x1ba   :  { %478 = vmatmul.mubr.f32.vlgmr.msra.gmra.mxu0 %v237_v52 }
 0x27a   :  { %v327_v54 = vpop.f32.mrf.mxu0 }
 0x27b   :  { %v328_v55 = vadd.f32 %v344_v53, %v327_v54 }
 0x27c   :  { %v479_v56 = vpop.f32.mrf.mxu0 }
 0x27d   :  { %v331_v57 = vmul.f32 1.442695, %v328_v55 }
 0x27f   :  { %486 = vpow2.f32 %v331_v57 }
 0x28c   :  { %v487_v58 = vpop.eup %486 }
 0x28d   :  { %334 = vst.msk [vmem:[%s746_s7] sm:$0xff] %vm333_vm2, %v487_v58 }
 0x28e   :  { %339 = vsyncpa [#allocation3], 1 }
 0x28f   :  { %340 = vsyncpa [#allocation5], 1 }

</bundles_post_ra>
